<compile_context>
chip_gen: v7x
topology: tpu7x:2x2x1
jax: 0.10.0
libtpu: 0.0.40
codegen_flags: <defaults>
</compile_context>

<pallas_src>
import functools

import jax
import jax.numpy as jnp
from jax.experimental import pallas as pl
from jax.experimental.pallas import tpu as pltpu


def _mhsa_kernel(x_ref, wq_ref, wk_ref, wv_ref, wo_ref, o_ref,
                 xbf_sc, q_sc, m_sc, l_sc, acc_sc, out_sc,
                 *, scale, block_k):
    """Grid = (batch b, head h, kv block).

    x_ref  : (1, N, D)   resident across (h, kv)
    wq_ref : (1, D, Dh)  per-head Q weight (bf16)
    wk_ref : (1, D, Dh)  per-head K weight (bf16)
    wv_ref : (1, D, Dh)  per-head V weight (bf16)
    wo_ref : (1, Dh, D)  per-head slice of the output projection (bf16)
    o_ref  : (1, N, D)   resident accumulator target across (h, kv)
    """
    h = pl.program_id(1)
    kv = pl.program_id(2)
    num_h = pl.num_programs(1)
    num_kv = pl.num_programs(2)

    # --- per-batch init: cast activations to bf16 once, zero the output acc.
    @pl.when(jnp.logical_and(h == 0, kv == 0))
    def _():
        xbf_sc[...] = x_ref[0].astype(jnp.bfloat16)
        out_sc[...] = jnp.zeros_like(out_sc)

    # --- per-head init: project Q for the full sequence (scale folded in once),
    #     reset the online-softmax running stats.
    @pl.when(kv == 0)
    def _():
        q = jnp.dot(xbf_sc[...], wq_ref[0], preferred_element_type=jnp.float32)
        q_sc[...] = (q * scale).astype(jnp.bfloat16)
        m_sc[...] = jnp.full_like(m_sc, -jnp.inf)
        l_sc[...] = jnp.zeros_like(l_sc)
        acc_sc[...] = jnp.zeros_like(acc_sc)

    # --- current KV tile: two separate projections (no fused-kv lane split).
    start = pl.multiple_of(kv * block_k, block_k)
    x_tile = xbf_sc[pl.ds(start, block_k), :]                         # (bk, D) bf16
    k = jnp.dot(x_tile, wk_ref[0],
                preferred_element_type=jnp.float32).astype(jnp.bfloat16)
    v = jnp.dot(x_tile, wv_ref[0],
                preferred_element_type=jnp.float32).astype(jnp.bfloat16)

    # --- online-softmax (flash) update, f32 math on the VPU.
    s = jnp.dot(q_sc[...], k.T, preferred_element_type=jnp.float32)   # (N, bk)
    m_prev = m_sc[...]
    m_new = jnp.maximum(m_prev, jnp.max(s, axis=-1, keepdims=True))
    alpha = jnp.exp(m_prev - m_new)
    p = jnp.exp(s - m_new)
    l_sc[...] = alpha * l_sc[...] + jnp.sum(p, axis=-1, keepdims=True)
    acc_sc[...] = alpha * acc_sc[...] + jnp.dot(
        p.astype(jnp.bfloat16), v, preferred_element_type=jnp.float32)
    m_sc[...] = m_new

    # --- per-head finalize: normalize (EUP approx reciprocal) and fold this
    #     head through its slice of the output projection into the f32 acc.
    @pl.when(kv == num_kv - 1)
    def _():
        out_h = acc_sc[...] * pl.reciprocal(l_sc[...], approx=True)   # (N, Dh) f32
        out_sc[...] += jnp.dot(out_h.astype(jnp.bfloat16), wo_ref[0],
                               preferred_element_type=jnp.float32)

    # --- per-batch finalize: single (N, D) store.
    #     (D < 128 => masked stores; skipped lane-dense repack since production
    #      HF hidden sizes are >= 128.)
    @pl.when(jnp.logical_and(h == num_h - 1, kv == num_kv - 1))
    def _():
        o_ref[0] = out_sc[...].astype(o_ref.dtype)


def attention_forward(x, wq_t, wkv_t, wo_t, *, heads, dim_head, max_block_k=512):
    """x: (B, N, D); weights in (in, out) layout (already transposed)."""
    B, N, D = x.shape
    inner = heads * dim_head
    assert wq_t.shape == (D, inner)
    assert wkv_t.shape == (D, 2 * inner)
    assert wo_t.shape == (inner, D)
    scale = dim_head ** -0.5

    # KV tile size bounds the (N, block_k) score tile (mandatory for large N on v7x).
    block_k = N if N <= max_block_k else max_block_k
    assert N % block_k == 0, "sequence length must be divisible by the KV block"
    num_kv = N // block_k

    # Weight layout prep (wrapper-side layout plumbing, not compute hoisting):
    # per-head (H, D, Dh) / (H, Dh, D) slabs in bf16 so each grid step gets
    # exactly one head's weights via BlockSpec — no in-kernel lane slicing.
    wq_h = wq_t.reshape(D, heads, dim_head).transpose(1, 0, 2).astype(jnp.bfloat16)
    wk_h = wkv_t[:, :inner].reshape(D, heads, dim_head).transpose(1, 0, 2).astype(jnp.bfloat16)
    wv_h = wkv_t[:, inner:].reshape(D, heads, dim_head).transpose(1, 0, 2).astype(jnp.bfloat16)
    wo_h = wo_t.reshape(heads, dim_head, D).astype(jnp.bfloat16)

    kernel = functools.partial(_mhsa_kernel, scale=scale, block_k=block_k)

    # NOTE: for production shapes one would additionally block several batch
    # rows per grid step to amortize the ~0.35us per-step overhead.
    return pl.pallas_call(
        kernel,
        out_shape=jax.ShapeDtypeStruct((B, N, D), x.dtype),
        grid_spec=pltpu.PrefetchScalarGridSpec(
            num_scalar_prefetch=0,
            grid=(B, heads, num_kv),
            in_specs=[
                pl.BlockSpec((1, N, D), lambda b, h, kv: (b, 0, 0)),
                pl.BlockSpec((1, D, dim_head), lambda b, h, kv: (h, 0, 0)),
                pl.BlockSpec((1, D, dim_head), lambda b, h, kv: (h, 0, 0)),
                pl.BlockSpec((1, D, dim_head), lambda b, h, kv: (h, 0, 0)),
                pl.BlockSpec((1, dim_head, D), lambda b, h, kv: (h, 0, 0)),
            ],
            out_specs=pl.BlockSpec((1, N, D), lambda b, h, kv: (b, 0, 0)),
            scratch_shapes=[
                pltpu.VMEM((N, D), jnp.bfloat16),         # x cast to bf16 (per batch)
                pltpu.VMEM((N, dim_head), jnp.bfloat16),  # per-head Q (scaled)
                pltpu.VMEM((N, 1), jnp.float32),          # running max m
                pltpu.VMEM((N, 1), jnp.float32),          # running sum l
                pltpu.VMEM((N, dim_head), jnp.float32),   # per-head attn accumulator
                pltpu.VMEM((N, D), jnp.float32),          # cross-head output accumulator
            ],
        ),
        compiler_params=pltpu.CompilerParams(
            dimension_semantics=("parallel", "arbitrary", "arbitrary")),
    )(x, wq_h, wk_h, wv_h, wo_h)


def attention_reference(x, wq_t, wkv_t, wo_t, *, heads, dim_head):
    """Pure-JAX f32 reference mirroring the PyTorch forward (no masks/context)."""
    B, N, D = x.shape
    inner = heads * dim_head
    scale = dim_head ** -0.5
    q = x @ wq_t
    kv = x @ wkv_t
    k, v = kv[..., :inner], kv[..., inner:]

    def split(t):  # b n (h d) -> b h n d
        return t.reshape(B, N, heads, dim_head).transpose(0, 2, 1, 3)

    q, k, v = split(q) * scale, split(k), split(v)
    sim = jnp.einsum('bhid,bhjd->bhij', q, k)
    attn = jax.nn.softmax(sim, axis=-1)
    out = jnp.einsum('bhij,bhjd->bhid', attn, v)
    out = out.transpose(0, 2, 1, 3).reshape(B, N, inner)
    return out @ wo_t


if __name__ == "__main__":
    # small, module-consistent shapes
    B, N, dim = 2, 8, 32
    heads, dim_head = 4, 8
    inner = heads * dim_head

    key = jax.random.PRNGKey(0)
    kx, kq, kkv, ko = jax.random.split(key, 4)

    x = jax.random.normal(kx, (B, N, dim), dtype=jnp.float32)
    wq_t = jax.random.normal(kq, (dim, inner), dtype=jnp.float32) * 0.1
    wkv_t = jax.random.normal(kkv, (dim, 2 * inner), dtype=jnp.float32) * 0.1
    wo_t = jax.random.normal(ko, (inner, dim), dtype=jnp.float32) * 0.1

    out = attention_forward(x, wq_t, wkv_t, wo_t, heads=heads, dim_head=dim_head)
    out = jax.block_until_ready(out)

    ref = attention_reference(x, wq_t, wkv_t, wo_t, heads=heads, dim_head=dim_head)
    assert out.shape == (B, N, dim)
    max_err = float(jnp.max(jnp.abs(out - ref)))
    # bf16 MXU operands + approx reciprocal => slightly looser tolerance than f32.
    assert jnp.allclose(out, ref, atol=5e-2, rtol=5e-2), f"mismatch vs reference (max abs err {max_err})"
    print("KERNEL_OK")
</pallas_src>

<mosaic_0001>
module attributes {stable_mosaic.version = 11 : i64} {
  func.func @_mhsa_kernel(%arg0: i32, %arg1: i32, %arg2: i32, %arg3: memref<1x8x32xf32, #tpu.memory_space<vmem>>, %arg4: memref<1x32x8xbf16, #tpu.memory_space<vmem>>, %arg5: memref<1x32x8xbf16, #tpu.memory_space<vmem>>, %arg6: memref<1x32x8xbf16, #tpu.memory_space<vmem>>, %arg7: memref<1x8x32xbf16, #tpu.memory_space<vmem>>, %arg8: memref<1x8x32xf32, #tpu.memory_space<vmem>>, %arg9: memref<8x32xbf16, #tpu.memory_space<vmem>>, %arg10: memref<8x8xbf16, #tpu.memory_space<vmem>>, %arg11: memref<8x1xf32, #tpu.memory_space<vmem>>, %arg12: memref<8x1xf32, #tpu.memory_space<vmem>>, %arg13: memref<8x8xf32, #tpu.memory_space<vmem>>, %arg14: memref<8x32xf32, #tpu.memory_space<vmem>>) attributes {dimension_semantics = [#tpu.dimension_semantics<parallel>, #tpu.dimension_semantics<arbitrary>, #tpu.dimension_semantics<arbitrary>], iteration_bounds = array<i64: 2, 4, 1>, scalar_prefetch = 0 : i64, scratch_operands = 6 : i64, tpu.core_type = #tpu.core_type<tc>, window_params = [{transform_indices = @transform_0, window_bounds = array<i64: 1, 8, 32>}, {transform_indices = @transform_1, window_bounds = array<i64: 1, 32, 8>}, {transform_indices = @transform_2, window_bounds = array<i64: 1, 32, 8>}, {transform_indices = @transform_3, window_bounds = array<i64: 1, 32, 8>}, {transform_indices = @transform_4, window_bounds = array<i64: 1, 8, 32>}, {transform_indices = @transform_5, window_bounds = array<i64: 1, 8, 32>}]} {
    %c0_i32 = arith.constant 0 : i32
    %0 = arith.cmpi eq, %arg1, %c0_i32 : i32
    %c0_i32_0 = arith.constant 0 : i32
    %1 = arith.cmpi eq, %arg2, %c0_i32_0 : i32
    %2 = arith.andi %0, %1 : i1
    %3 = arith.extui %2 : i1 to i32
    %c0_i32_1 = arith.constant 0 : i32
    %4 = arith.cmpi ne, %3, %c0_i32_1 : i32
    scf.if %4 {
      %c0_33 = arith.constant 0 : index
      %c0_34 = arith.constant 0 : index
      %c0_35 = arith.constant 0 : index
      %54 = vector.load %arg3[%c0_33, %c0_34, %c0_35] : memref<1x8x32xf32, #tpu.memory_space<vmem>>, vector<1x8x32xf32>
      %55 = vector.shape_cast %54 : vector<1x8x32xf32> to vector<8x32xf32>
      %56 = arith.truncf %55 : vector<8x32xf32> to vector<8x32xbf16>
      %c0_36 = arith.constant 0 : index
      %c0_37 = arith.constant 0 : index
      %57 = vector.load %arg9[%c0_36, %c0_37] : memref<8x32xbf16, #tpu.memory_space<vmem>>, vector<8x32xbf16>
      tpu.vector_store %arg9[%c0_36, %c0_37], %56 {strides = array<i32>} : memref<8x32xbf16, #tpu.memory_space<vmem>>, vector<8x32xbf16>,
      %cst_38 = arith.constant 0.000000e+00 : f32
      %58 = vector.broadcast %cst_38 : f32 to vector<8x32xf32>
      %c0_39 = arith.constant 0 : index
      %c0_40 = arith.constant 0 : index
      %59 = vector.load %arg14[%c0_39, %c0_40] : memref<8x32xf32, #tpu.memory_space<vmem>>, vector<8x32xf32>
      tpu.vector_store %arg14[%c0_39, %c0_40], %58 {strides = array<i32>} : memref<8x32xf32, #tpu.memory_space<vmem>>, vector<8x32xf32>,
    } else {
    }
    %c0_i32_2 = arith.constant 0 : i32
    %5 = arith.cmpi eq, %arg2, %c0_i32_2 : i32
    %6 = arith.extui %5 : i1 to i32
    %c0_i32_3 = arith.constant 0 : i32
    %7 = arith.cmpi ne, %6, %c0_i32_3 : i32
    scf.if %7 {
      %c0_33 = arith.constant 0 : index
      %c0_34 = arith.constant 0 : index
      %54 = vector.load %arg9[%c0_33, %c0_34] : memref<8x32xbf16, #tpu.memory_space<vmem>>, vector<8x32xbf16>
      %c0_35 = arith.constant 0 : index
      %c0_36 = arith.constant 0 : index
      %c0_37 = arith.constant 0 : index
      %55 = vector.load %arg4[%c0_35, %c0_36, %c0_37] : memref<1x32x8xbf16, #tpu.memory_space<vmem>>, vector<1x32x8xbf16>
      %56 = vector.shape_cast %55 : vector<1x32x8xbf16> to vector<32x8xbf16>
      %cst_38 = arith.constant dense<0.000000e+00> : vector<8x8xf32>
      %57 = tpu.matmul %54, %56, %cst_38 {dimension_numbers = #tpu.dot_dimension_numbers<[1], [0], [0], [1], [0, 0, 1, 1], [], []>} : vector<8x32xbf16>, vector<32x8xbf16>, vector<8x8xf32> -> vector<8x8xf32>
      %cst_39 = arith.constant 0.353553385 : f32
      %58 = vector.broadcast %cst_39 : f32 to vector<8x8xf32>
      %59 = arith.mulf %57, %58 : vector<8x8xf32>
      %60 = arith.truncf %59 : vector<8x8xf32> to vector<8x8xbf16>
      %c0_40 = arith.constant 0 : index
      %c0_41 = arith.constant 0 : index
      %61 = vector.load %arg10[%c0_40, %c0_41] : memref<8x8xbf16, #tpu.memory_space<vmem>>, vector<8x8xbf16>
      tpu.vector_store %arg10[%c0_40, %c0_41], %60 {strides = array<i32>} : memref<8x8xbf16, #tpu.memory_space<vmem>>, vector<8x8xbf16>,
      %cst_42 = arith.constant 0xFF800000 : f32
      %62 = vector.broadcast %cst_42 : f32 to vector<8x1xf32>
      %c0_43 = arith.constant 0 : index
      %c0_44 = arith.constant 0 : index
      %63 = vector.load %arg11[%c0_43, %c0_44] : memref<8x1xf32, #tpu.memory_space<vmem>>, vector<8x1xf32>
      tpu.vector_store %arg11[%c0_43, %c0_44], %62 {strides = array<i32>} : memref<8x1xf32, #tpu.memory_space<vmem>>, vector<8x1xf32>,
      %cst_45 = arith.constant 0.000000e+00 : f32
      %64 = vector.broadcast %cst_45 : f32 to vector<8x1xf32>
      %c0_46 = arith.constant 0 : index
      %c0_47 = arith.constant 0 : index
      %65 = vector.load %arg12[%c0_46, %c0_47] : memref<8x1xf32, #tpu.memory_space<vmem>>, vector<8x1xf32>
      tpu.vector_store %arg12[%c0_46, %c0_47], %64 {strides = array<i32>} : memref<8x1xf32, #tpu.memory_space<vmem>>, vector<8x1xf32>,
      %cst_48 = arith.constant 0.000000e+00 : f32
      %66 = vector.broadcast %cst_48 : f32 to vector<8x8xf32>
      %c0_49 = arith.constant 0 : index
      %c0_50 = arith.constant 0 : index
      %67 = vector.load %arg13[%c0_49, %c0_50] : memref<8x8xf32, #tpu.memory_space<vmem>>, vector<8x8xf32>
      tpu.vector_store %arg13[%c0_49, %c0_50], %66 {strides = array<i32>} : memref<8x8xf32, #tpu.memory_space<vmem>>, vector<8x8xf32>,
    } else {
    }
    %c8_i32 = arith.constant 8 : i32
    %8 = arith.muli %arg2, %c8_i32 : i32
    %9 = tpu.assume_multiple %8, 8 : i32
    %10 = arith.index_cast %9 : i32 to index
    %c0 = arith.constant 0 : index
    %11 = vector.load %arg9[%10, %c0] : memref<8x32xbf16, #tpu.memory_space<vmem>>, vector<8x32xbf16>
    %c0_4 = arith.constant 0 : index
    %c0_5 = arith.constant 0 : index
    %c0_6 = arith.constant 0 : index
    %12 = vector.load %arg5[%c0_4, %c0_5, %c0_6] : memref<1x32x8xbf16, #tpu.memory_space<vmem>>, vector<1x32x8xbf16>
    %13 = vector.shape_cast %12 : vector<1x32x8xbf16> to vector<32x8xbf16>
    %cst = arith.constant dense<0.000000e+00> : vector<8x8xf32>
    %14 = tpu.matmul %11, %13, %cst {dimension_numbers = #tpu.dot_dimension_numbers<[1], [0], [0], [1], [0, 0, 1, 1], [], []>} : vector<8x32xbf16>, vector<32x8xbf16>, vector<8x8xf32> -> vector<8x8xf32>
    %15 = arith.truncf %14 : vector<8x8xf32> to vector<8x8xbf16>
    %c0_7 = arith.constant 0 : index
    %c0_8 = arith.constant 0 : index
    %c0_9 = arith.constant 0 : index
    %16 = vector.load %arg6[%c0_7, %c0_8, %c0_9] : memref<1x32x8xbf16, #tpu.memory_space<vmem>>, vector<1x32x8xbf16>
    %17 = vector.shape_cast %16 : vector<1x32x8xbf16> to vector<32x8xbf16>
    %cst_10 = arith.constant dense<0.000000e+00> : vector<8x8xf32>
    %18 = tpu.matmul %11, %17, %cst_10 {dimension_numbers = #tpu.dot_dimension_numbers<[1], [0], [0], [1], [0, 0, 1, 1], [], []>} : vector<8x32xbf16>, vector<32x8xbf16>, vector<8x8xf32> -> vector<8x8xf32>
    %19 = arith.truncf %18 : vector<8x8xf32> to vector<8x8xbf16>
    %c0_11 = arith.constant 0 : index
    %c0_12 = arith.constant 0 : index
    %20 = vector.load %arg10[%c0_11, %c0_12] : memref<8x8xbf16, #tpu.memory_space<vmem>>, vector<8x8xbf16>
    %21 = tpu.transpose %15, [1, 0] : vector<8x8xbf16> -> vector<8x8xbf16>
    %cst_13 = arith.constant dense<0.000000e+00> : vector<8x8xf32>
    %22 = tpu.matmul %20, %21, %cst_13 {dimension_numbers = #tpu.dot_dimension_numbers<[1], [0], [0], [1], [0, 0, 1, 1], [], []>} : vector<8x8xbf16>, vector<8x8xbf16>, vector<8x8xf32> -> vector<8x8xf32>
    %c0_14 = arith.constant 0 : index
    %c0_15 = arith.constant 0 : index
    %23 = vector.load %arg11[%c0_14, %c0_15] : memref<8x1xf32, #tpu.memory_space<vmem>>, vector<8x1xf32>
    %cst_16 = arith.constant dense<0xFF800000> : vector<8xf32>
    %24 = vector.multi_reduction <maximumf>, %22, %cst_16 [1] : vector<8x8xf32> to vector<8xf32>
    %25 = vector.shape_cast %24 : vector<8xf32> to vector<8x1xf32>
    %26 = arith.maximumf %23, %25 : vector<8x1xf32>
    %27 = arith.subf %23, %26 : vector<8x1xf32>
    %28 = math.exp %27 : vector<8x1xf32>
    %29 = vector.broadcast %26 : vector<8x1xf32> to vector<8x8xf32>
    %30 = arith.subf %22, %29 : vector<8x8xf32>
    %31 = math.exp %30 : vector<8x8xf32>
    %c0_17 = arith.constant 0 : index
    %c0_18 = arith.constant 0 : index
    %32 = vector.load %arg12[%c0_17, %c0_18] : memref<8x1xf32, #tpu.memory_space<vmem>>, vector<8x1xf32>
    %33 = arith.mulf %28, %32 : vector<8x1xf32>
    %cst_19 = arith.constant dense<0.000000e+00> : vector<8xf32>
    %34 = vector.multi_reduction <add>, %31, %cst_19 [1] : vector<8x8xf32> to vector<8xf32>
    %35 = vector.shape_cast %34 : vector<8xf32> to vector<8x1xf32>
    %36 = arith.addf %33, %35 : vector<8x1xf32>
    %c0_20 = arith.constant 0 : index
    %c0_21 = arith.constant 0 : index
    %37 = vector.load %arg12[%c0_20, %c0_21] : memref<8x1xf32, #tpu.memory_space<vmem>>, vector<8x1xf32>
    tpu.vector_store %arg12[%c0_20, %c0_21], %36 {strides = array<i32>} : memref<8x1xf32, #tpu.memory_space<vmem>>, vector<8x1xf32>,
    %c0_22 = arith.constant 0 : index
    %c0_23 = arith.constant 0 : index
    %38 = vector.load %arg13[%c0_22, %c0_23] : memref<8x8xf32, #tpu.memory_space<vmem>>, vector<8x8xf32>
    %39 = vector.broadcast %28 : vector<8x1xf32> to vector<8x8xf32>
    %40 = arith.mulf %39, %38 : vector<8x8xf32>
    %41 = arith.truncf %31 : vector<8x8xf32> to vector<8x8xbf16>
    %cst_24 = arith.constant dense<0.000000e+00> : vector<8x8xf32>
    %42 = tpu.matmul %41, %19, %cst_24 {dimension_numbers = #tpu.dot_dimension_numbers<[1], [0], [0], [1], [0, 0, 1, 1], [], []>} : vector<8x8xbf16>, vector<8x8xbf16>, vector<8x8xf32> -> vector<8x8xf32>
    %43 = arith.addf %40, %42 : vector<8x8xf32>
    %c0_25 = arith.constant 0 : index
    %c0_26 = arith.constant 0 : index
    %44 = vector.load %arg13[%c0_25, %c0_26] : memref<8x8xf32, #tpu.memory_space<vmem>>, vector<8x8xf32>
    tpu.vector_store %arg13[%c0_25, %c0_26], %43 {strides = array<i32>} : memref<8x8xf32, #tpu.memory_space<vmem>>, vector<8x8xf32>,
    %c0_27 = arith.constant 0 : index
    %c0_28 = arith.constant 0 : index
    %45 = vector.load %arg11[%c0_27, %c0_28] : memref<8x1xf32, #tpu.memory_space<vmem>>, vector<8x1xf32>
    tpu.vector_store %arg11[%c0_27, %c0_28], %26 {strides = array<i32>} : memref<8x1xf32, #tpu.memory_space<vmem>>, vector<8x1xf32>,
    %c0_i32_29 = arith.constant 0 : i32
    %46 = arith.cmpi eq, %arg2, %c0_i32_29 : i32
    %47 = arith.extui %46 : i1 to i32
    %c0_i32_30 = arith.constant 0 : i32
    %48 = arith.cmpi ne, %47, %c0_i32_30 : i32
    scf.if %48 {
      %c0_33 = arith.constant 0 : index
      %c0_34 = arith.constant 0 : index
      %54 = vector.load %arg13[%c0_33, %c0_34] : memref<8x8xf32, #tpu.memory_space<vmem>>, vector<8x8xf32>
      %c0_35 = arith.constant 0 : index
      %c0_36 = arith.constant 0 : index
      %55 = vector.load %arg12[%c0_35, %c0_36] : memref<8x1xf32, #tpu.memory_space<vmem>>, vector<8x1xf32>
      %56 = tpu.reciprocal %55 {approx = true} : vector<8x1xf32> -> vector<8x1xf32>
      %57 = vector.broadcast %56 : vector<8x1xf32> to vector<8x8xf32>
      %58 = arith.mulf %54, %57 : vector<8x8xf32>
      %c0_37 = arith.constant 0 : index
      %c0_38 = arith.constant 0 : index
      %59 = vector.load %arg14[%c0_37, %c0_38] : memref<8x32xf32, #tpu.memory_space<vmem>>, vector<8x32xf32>
      %60 = arith.truncf %58 : vector<8x8xf32> to vector<8x8xbf16>
      %c0_39 = arith.constant 0 : index
      %c0_40 = arith.constant 0 : index
      %c0_41 = arith.constant 0 : index
      %61 = vector.load %arg7[%c0_39, %c0_40, %c0_41] : memref<1x8x32xbf16, #tpu.memory_space<vmem>>, vector<1x8x32xbf16>
      %62 = vector.shape_cast %61 : vector<1x8x32xbf16> to vector<8x32xbf16>
      %cst_42 = arith.constant dense<0.000000e+00> : vector<8x32xf32>
      %63 = tpu.matmul %60, %62, %cst_42 {dimension_numbers = #tpu.dot_dimension_numbers<[1], [0], [0], [1], [0, 0, 1, 1], [], []>} : vector<8x8xbf16>, vector<8x32xbf16>, vector<8x32xf32> -> vector<8x32xf32>
      %64 = arith.addf %59, %63 : vector<8x32xf32>
      %c0_43 = arith.constant 0 : index
      %c0_44 = arith.constant 0 : index
      %65 = vector.load %arg14[%c0_43, %c0_44] : memref<8x32xf32, #tpu.memory_space<vmem>>, vector<8x32xf32>
      tpu.vector_store %arg14[%c0_43, %c0_44], %64 {strides = array<i32>} : memref<8x32xf32, #tpu.memory_space<vmem>>, vector<8x32xf32>,
    } else {
    }
    %c3_i32 = arith.constant 3 : i32
    %49 = arith.cmpi eq, %arg1, %c3_i32 : i32
    %c0_i32_31 = arith.constant 0 : i32
    %50 = arith.cmpi eq, %arg2, %c0_i32_31 : i32
    %51 = arith.andi %49, %50 : i1
    %52 = arith.extui %51 : i1 to i32
    %c0_i32_32 = arith.constant 0 : i32
    %53 = arith.cmpi ne, %52, %c0_i32_32 : i32
    scf.if %53 {
      %c0_33 = arith.constant 0 : index
      %c0_34 = arith.constant 0 : index
      %54 = vector.load %arg14[%c0_33, %c0_34] : memref<8x32xf32, #tpu.memory_space<vmem>>, vector<8x32xf32>
      %c0_35 = arith.constant 0 : index
      %c0_36 = arith.constant 0 : index
      %c0_37 = arith.constant 0 : index
      %55 = vector.load %arg8[%c0_35, %c0_36, %c0_37] : memref<1x8x32xf32, #tpu.memory_space<vmem>>, vector<1x8x32xf32>
      %56 = vector.shape_cast %55 : vector<1x8x32xf32> to vector<8x32xf32>
      %57 = vector.shape_cast %54 : vector<8x32xf32> to vector<1x8x32xf32>
      tpu.vector_store %arg8[%c0_35, %c0_36, %c0_37], %57 {strides = array<i32>} : memref<1x8x32xf32, #tpu.memory_space<vmem>>, vector<1x8x32xf32>,
    } else {
    }
    return
  }
  func.func @transform_0(%arg0: i32, %arg1: i32, %arg2: i32) -> (i32, i32, i32) {
    %c0_i32 = arith.constant 0 : i32
    %c0_i32_0 = arith.constant 0 : i32
    %c0_i32_1 = arith.constant 0 : i32
    return %arg0, %c0_i32, %c0_i32_0 : i32, i32, i32
  }
  func.func @transform_1(%arg0: i32, %arg1: i32, %arg2: i32) -> (i32, i32, i32) {
    %c0_i32 = arith.constant 0 : i32
    %c0_i32_0 = arith.constant 0 : i32
    %c0_i32_1 = arith.constant 0 : i32
    return %arg1, %c0_i32, %c0_i32_0 : i32, i32, i32
  }
  func.func @transform_2(%arg0: i32, %arg1: i32, %arg2: i32) -> (i32, i32, i32) {
    %c0_i32 = arith.constant 0 : i32
    %c0_i32_0 = arith.constant 0 : i32
    %c0_i32_1 = arith.constant 0 : i32
    return %arg1, %c0_i32, %c0_i32_0 : i32, i32, i32
  }
  func.func @transform_3(%arg0: i32, %arg1: i32, %arg2: i32) -> (i32, i32, i32) {
    %c0_i32 = arith.constant 0 : i32
    %c0_i32_0 = arith.constant 0 : i32
    %c0_i32_1 = arith.constant 0 : i32
    return %arg1, %c0_i32, %c0_i32_0 : i32, i32, i32
  }
  func.func @transform_4(%arg0: i32, %arg1: i32, %arg2: i32) -> (i32, i32, i32) {
    %c0_i32 = arith.constant 0 : i32
    %c0_i32_0 = arith.constant 0 : i32
    %c0_i32_1 = arith.constant 0 : i32
    return %arg1, %c0_i32, %c0_i32_0 : i32, i32, i32
  }
  func.func @transform_5(%arg0: i32, %arg1: i32, %arg2: i32) -> (i32, i32, i32) {
    %c0_i32 = arith.constant 0 : i32
    %c0_i32_0 = arith.constant 0 : i32
    %c0_i32_1 = arith.constant 0 : i32
    return %arg0, %c0_i32, %c0_i32_0 : i32, i32, i32
  }
}

</mosaic_0001>

<bundles_post_ra>
// kernel: tpu_custom_call.1
= control target key start
LH: loop header
LB: loop body
LE: loop exit
PB: predicated region body
PF: predicated region fallthrough
CT: control target
= control target key end

     0   :  { %10 = vsyncpa [#allocation9], 0  ;;  %s1364_s0 = inlined_call_operand.vmem [shape: f32[2,8,32], index: 0, kind: input, shape index: {}]   ;;  %s1365_s1 = inlined_call_operand.vmem [shape: bf16[4,32,8], index: 1, kind: input, shape index: {}]   ;;  %s1366_s2 = inlined_call_operand.vmem [shape: bf16[4,32,8], index: 2, kind: input, shape index: {}]   ;;  %s1367_s3 = inlined_call_operand.vmem [shape: bf16[4,32,8], index: 3, kind: input, shape index: {}]   ;;  %s1368_s4 = inlined_call_operand.vmem [shape: bf16[4,8,32], index: 4, kind: input, shape index: {}]   ;;  %s1369_s5 = inlined_call_operand.hbm [shape: f32[2,8,32], index: 5, kind: output, shape index: {}]  }
   0x1   :  { %12 = vsyncpa [#allocation9 + $0x1], 0  ;;  %s1179_s18 = smov 0   ;;  %s1181_s19 = smov 0  }
   0x2   :  { %s1183_s20 = smov 0   ;;  %s1185_s21 = smov 0  }
   0x3   :  { %s1187_s22 = smov 0   ;;  %s1189_s23 = smov 0  }
   0x4   :  { %s1191_s24 = smov 0   ;;  %s1193_s25 = smov 0  }
   0x5 LB: > { %1376 = sst [smem:[#allocation11_spill]] %s1121_s20  ;;  %s863_s26 = sadd.s32 4294967295, %s1141_s25   ;;  %s1141_s25 = sphi %s1193_s25, %s18_s25   ;;  %s1137_s24 = sphi %s1191_s24, %s1392_s24   ;;  %s1133_s23 = sphi %s1189_s23, %s1391_s23   ;;  %s1129_s22 = sphi %s1187_s22, %s1390_s22   ;;  %s1125_s21 = sphi %s1185_s21, %s1389_s21   ;;  %s1121_s20 = sphi %s1183_s20, %s1388_s20   ;;  %s1117_s19 = sphi %s1181_s19, %s1394_s19   ;;  %s1113_s18 = sphi %s1179_s18, %s1393_s18  }
   0x6   : > { %1377 = sst [smem:[#allocation12_spill]] %s1133_s23  ;;  %s864_s27 = sadd.s32 4294967294, %s1141_s25  }
   0x7   : > { %1378 = sst [smem:[#allocation13_spill]] %s1137_s24  ;;  %s33_s28 = sadd.s32 1, %s1133_s23 }
   0x8   : > { %p35_p0 = scmp.ge.s32.totalorder %s33_s28, 4  ;;  %s37_s29 = sadd.s32 1, %s1137_s24 }
   0x9   : > { %p184_p1 = scmp.ne.s32.totalorder %s1121_s20, %s1117_s19  ;;  %p185_p2 = scmp.eq.s32.totalorder %s863_s26, 7 }
   0xa   : > { %s1396_s28 = smov (%p35_p0, %s33_s28), 0  ;;  %s1398_s29 = smov (!%p35_p0, %s37_s29), %s1137_s24 }
   0xb   : > { %1379 = sst [smem:[#allocation14_spill]] %s1396_s28  ;;  %p1228_p3 = por %p185_p2, %p184_p1 }
   0xc   : > { %p190_p4 = scmp.ne.s32.totalorder %s1117_s19, %s1113_s18  ;;  %p39_p5 = scmp.ge.s32.totalorder %s1398_s29, 2 }
   0xd   : > { %p191_p6 = scmp.eq.s32.totalorder %s864_s27, 7  ;;  %p867_p7 = scmp.ge.s32.totalorder %s1141_s25, 1 }
   0xe   : > { %p247_p8 = scmp.lt.s32.totalorder %s1141_s25, 9  ;;  %s1400_s29 = smov (%p39_p5, %s1398_s29), 0 }
   0xf   : > { %1381 = sst [smem:[#allocation15_spill]] %s1400_s29  ;;  %p1238_p9 = por %p191_p6, %p190_p4 }
  0x10   : > { %p248_p10 = pnand %p867_p7, %p247_p8  ;;  %s171_s7 = ssub.s32 %s1137_s24, %s1400_s29 }
  0x11   : > { %s1382_s6 = scalar_select %p1238_p9, 1, 0 }
  0x12   : > { %s174_s8 = sadd.s32 1, %s1121_s20  ;;  %p172_p11 = scmp.eq.s32.totalorder %s171_s7, 0 }
  0x13   : > { %1383 = sst [smem:[#allocation16_spill]] %s1382_s6  ;;  %251 = sbr.rel (%p248_p10) target bundleno = 1312 (0x520), region = 40 }
  0x14   : > { %s1246_s9 = scalar_select %p172_p11, %s1121_s20, %s174_s8  }
  0x15   : > { %s1371_s10 = sand.u32 (!%p248_p10), 1, %s1117_s19   ;;  %p293_p12 = scmp.lt.s32.totalorder (!%p248_p10), %s1129_s22, 1 }
  0x16   : > { %1384 = sst [smem:[#allocation17_spill]] %s1246_s9  ;;  %s1252_s11 = sshll.u32 (!%p248_p10), %s1371_s10, 3 }
  0x17   : > { %p297_p13 = scmp.lt.s32.totalorder (!%p248_p10), %s1125_s21, 3  ;;  %p317_p0 = scmp.eq.s32.totalorder (!%p248_p10), %s1125_s21, 0 }
  0x1a   : > { %s294_s12 = scalar_select %p293_p12, %s1129_s22, 1 }
  0x1b   : > { %s298_s13 = scalar_select %p297_p13, %s1125_s21, 3 }
  0x1c   : > { %s869_s14 = sshll.u32 %s294_s12, 3  ;;  %322 = sbr.rel (!%p317_p0) target bundleno = 35 (0x23), region = 44  ;;  %vm325_vm0 = vcmask (%p317_p0), 257024   ;;  %vm327_vm1 = vcmask (%p317_p0), 261120   ;;  %v1143_v2 = vmov (%p317_p0), 0.0  }
  0x1d   : > { %s296_s17 = scalar_lea.vmem %s1364_s0, %s869_s14  ;;  %s895_s26 = sshll.u32 %s298_s13, 4  ;;  %328 = vst.msk [vmem:[#allocation7] sm:$0xff] (%p317_p0), %vm327_vm1, %v1143_v2 }
  0x1e   : > { %s301_s8 = scalar_lea.vmem %s1365_s1, %s895_s26  ;;  %s306_s10 = scalar_lea.vmem %s1366_s2, %s895_s26  ;;  %v323_v0 = vld [vmem:[%s296_s17] sm:$0xff] (%p317_p0) }
  0x1f   : > { %s1270_s9 = scalar_lea.vmem %s1367_s3, %s895_s26  ;;  %s876_s20 = sshll.u32 %s298_s13, 2  ;;  %v324_v1 = vpack.c.bf16 (%p317_p0), %v323_v0, %v323_v0 }
  0x20   : > { %s1275_s15 = scalar_lea.vmem %s1368_s4, %s876_s20  ;;  %s292_s14 = scalar_lea.vmem [#allocation8], %s1252_s11 }
  0x21   : > { %326 = vst.msk [vmem:[#allocation2] sm:$0xf] (%p317_p0), %vm325_vm0, %v324_v1 }
  0x23 PF: > { %v1035_v3 = vld [vmem:[%s301_s8] sm:$0xff]   ;;  %v1144_v4 = vmov 0.0   ;;  %v1037_v6 = vld [vmem:[%s301_s8 + $0x8] sm:$0xff]   ;;  %vm1145_vm2 = vmmov 0   ;;  %vm349_vm3 = vcmask 261120   ;;  %vm400_vm4 = vcmask 64512  }
  0x24   : > { %915 = vmatprep.subr.bf16.mxu0 %v1144_v4  ;;  %923 = vmatprep.subr.bf16.mxu1 %v1144_v4  ;;  %v1036_v5 = vld [vmem:[%s306_s10] sm:$0xff]   ;;  %v1038_v7 = vld [vmem:[%s306_s10 + $0x8] sm:$0xff]   ;;  %401 = vst.msk [vmem:[#allocation6] sm:$0xff] %vm400_vm4, %v1144_v4  ;;  %vm395_vm5 = vcmask 60416   ;;  %vm397_vm6 = vcmask 7168   ;;  %v1146_v24 = vmov -inf  }
  0x25   : > { %916 = vmatpush3.bf16.msra.mxu0 %v1035_v3  ;;  %919 = vmatprep.mubr.msk.bf16.mxu0 %vm1145_vm2, %v1144_v4  ;;  %v1039_v23 = vld [vmem:[%s1270_s9] sm:$0xff]   ;;  %398 = vst.msk [vmem:[#allocation4] sm:$0xff] %vm397_vm6, %v1146_v24  ;;  %399 = vst.msk [vmem:[#allocation5] sm:$0xff] %vm397_vm6, %v1144_v4  ;;  %v1040_v25 = vld [vmem:[%s1270_s9 + $0x8] sm:$0xff]   ;;  %v1147_v31 = vmov 0   ;;  %vm609_vm7 = vcmask 1043456  }
  0x26   : > { %924 = vmatpush3.bf16.msra.mxu1 %v1036_v5  ;;  %917 = vmatprep.subr.bf16.mxu0 %v1144_v4  ;;  %v670_v50 = vld [vmem:[%s1275_s15] sm:$0xf]  ;;  %p719_p1 = scmp.eq.s32.totalorder %s1125_s21, 3 }
  0x27   : > { %925 = vmatprep.subr.bf16.mxu1 %v1144_v4  ;;  %927 = vmatprep.mubr.msk.bf16.mxu1 %vm1145_vm2, %v1144_v4  ;;  %v675_v51 = vsel %vm609_vm7, %v670_v50, 0 }
  0x28   : > { %v332_v8 = vld [vmem:[#allocation2] sm:$0xf]  ;;  %1033 = vset.pattern.permute.xlu0 %v1147_v31  ;;  %1034 = vset.pattern.permute.xlu1 %v1147_v31 }
  0x29   : > { %918 = vmatpush3.bf16.msra.mxu0 %v1037_v6  ;;  %v407_v9 = vld [vmem:[#allocation2] sm:$0xf] }
  0x2a   : > { %926 = vmatpush3.bf16.msra.mxu1 %v1038_v7  ;;  %931 = vmatprep.subr.bf16.mxu0 %v1144_v4  ;;  %v668_v6 = vld [vmem:[#allocation7] sm:$0xff] }
  0x2b   : > { %939 = vmatprep.subr.bf16.mxu1 %v1144_v4  ;;  %v598_v58 = vld [vmem:[#allocation6] sm:$0xff] }
  0x2c   : > { %920 = vmatmul.mubr.msk.bf16.vlgmr.msra.gmra.mrb[0].mxu0 %vm349_vm3, %v332_v8  ;;  %v574_v32 = vld [vmem:[#allocation4] sm:$0xff]  ;;  %v590_v52 = vld [vmem:[#allocation5] sm:$0xff] }
  0x2d   : > { %928 = vmatmul.mubr.msk.bf16.vlgmr.msra.gmra.mrb[0].mxu1 %vm349_vm3, %v407_v9  ;;  %935 = vmatprep.mubr.msk.bf16.mxu0 %vm1145_vm2, %v1144_v4 }
  0x2e   : > { %941 = vmatprep.mubr.msk.bf16.mxu1 %vm1145_vm2, %v1144_v4  ;;  %932 = vmatpush3.bf16.msra.mxu0 %v1039_v23 }
  0x2f   : > { %933 = vmatprep.subr.bf16.mxu0 %v1144_v4 }
  0x32   : > { %934 = vmatpush3.bf16.msra.mxu0 %v1040_v25 }
  0x33   : > { %945 = vmatprep.subr.bf16.mxu0 %v1144_v4 }
  0x35   : > { %936 = vmatmul.mubr.msk.bf16.vlgmr.msra.gmra.mrb[4].mxu0 %vm349_vm3, %v407_v9 }
  0x36   : > { %947 = vmatprep.mubr.msk.bf16.mxu0 %vm1145_vm2, %v1144_v4 }
  0xff   : > { %v387_v10 = vpop.f32.mrb[0].mxu0 }
 0x100   : > { %v393_v11 = vmul.f32 0.35355338, %v387_v10  ;;  %v462_v12 = vpop.f32.mrb[0].mxu1  ;;  %v921_v13 = vpop.f32.mrb[1].mxu0 }
 0x101   : > { %v468_v14 = vpack.c.bf16 %v462_v12, %v462_v12  ;;  %v929_v15 = vpop.f32.mrb[1].mxu1  ;;  %v390_v16 = vpop.f32.mrb[2].mxu0 }
 0x102   : > { %v394_v17 = vpack.c.bf16 %v393_v11, %v393_v11  ;;  %v465_v18 = vpop.f32.mrb[2].mxu1  ;;  %v922_v19 = vpop.f32.mrb[3].mxu0 }
 0x103   : > { %v532_v20 = vsel %vm400_vm4, %v468_v14, 0  ;;  %v930_v21 = vpop.f32.mrb[3].mxu1 }
 0x104   : > { %396 = vst.msk [vmem:[#allocation3] sm:$0xf] %vm395_vm5, %v394_v17  ;;  %940 = vmatpush3.bf16.xpose.msra.mxu1 %v532_v20 }
 0x105   : > { %951 = vmatprep.subr.bf16.mxu1 %v1144_v4 }
 0x108   : > { %v519_v36 = vpop.f32.mrb[4].mxu0 }
 0x109   : > { %v525_v37 = vpack.c.bf16 %v519_v36, %v519_v36  ;;  %v937_v38 = vpop.f32.mrb[5].mxu0 }
 0x10a   : > { %v522_v39 = vpop.f32.mrb[6].mxu0 }
 0x10b   : > { %v526_v22 = vld [vmem:[#allocation3] sm:$0xf]  ;;  %v611_v40 = vsel %vm609_vm7, %v525_v37, 0  ;;  %v938_v41 = vpop.f32.mrb[7].mxu0 }
 0x10c   : > { %942 = vmatmul.mubr.msk.bf16.vlgmr.msra.gmra.mrb[4].mxu1 %vm400_vm4, %v526_v22  ;;  %946 = vmatpush3.bf16.msra.mxu0 %v611_v40 }
 0x10d   : > { %953 = vmatprep.mubr.msk.bf16.mxu1 %vm1145_vm2, %v1144_v4  ;;  %952 = vmatpush3.bf16.msra.mxu1 %v675_v51 }
 0x1df   : > { %v568_v26 = vpop.f32.mrb[4].mxu1 }
 0x1e0   : > { %v943_v27 = vpop.f32.mrb[5].mxu1  ;;  %v575_v28 = vsel %vm400_vm4, %v568_v26, -inf }
 0x1e1   : > { %576 = vmax.xlane.f32.xlu0 %v575_v28  ;;  %v571_v29 = vpop.f32.mrb[6].mxu1 }
 0x1e2   : > { %v944_v30 = vpop.f32.mrb[7].mxu1 }
 0x26e   : > { %v577_v33 = vpop.xlane.xlu0 %576 }
 0x26f   : > { %v578_v34 = vmax.f32 %v574_v32, %v577_v33 }
 0x271   : > { %v579_v35 = vsub.f32 %v574_v32, %v578_v34  ;;  %655 = vst.msk [vmem:[#allocation4] sm:$0xff] %vm397_vm6, %v578_v34  ;;  %584 = vperm.xlu0 %1033, %v578_v34  }
 0x273   : > { %v580_v48 = vmul.f32 1.442695, %v579_v35 }
 0x2f0   : > { %v585_v42 = vpop.permute.xlu0 %584 }
 0x2f1   : > { %v587_v43 = vsub.f32 %v568_v26, %v585_v42 }
 0x2f3   : > { %v588_v44 = vmul.f32 1.442695, %v587_v43 }
 0x2f5   : > { %1041 = vpow2.f32 %v588_v44 }
 0x2f6   : > { %1043 = vpow2.f32 %v580_v48 }
 0x2ff   : > { %v1042_v45 = vpop.eup %1041 }
 0x300   : > { %v592_v46 = vsel %vm400_vm4, %v1042_v45, 0.0  ;;  %v605_v47 = vpack.c.bf16 %v1042_v45, %v1042_v45  ;;  %v1044_v49 = vpop.eup %1043 }
 0x301   : > { %593 = vadd.xlane.f32.xlu1 %v592_v46  ;;  %v591_v53 = vmul.f32 %v1044_v49, %v590_v52 }
 0x302   : > { %948 = vmatmul.mubr.msk.bf16.vlgmr.msra.gmra.mrb[8].mxu0 %vm400_vm4, %v605_v47 }
 0x312   : > { %601 = vperm.xlu1 %1034, %v1044_v49  }
 0x38e   : > { %v594_v54 = vpop.xlane.xlu1 %593 }
 0x38f   : > { %v595_v55 = vadd.f32 %v594_v54, %v591_v53 }
 0x391   : > { %597 = vst.msk [vmem:[#allocation5] sm:$0xff] %vm397_vm6, %v595_v55 }
 0x392   : > { %v602_v59 = vpop.permute.xlu1 %601 }
 0x393   : > { %v604_v60 = vmul.f32 %v602_v59, %v598_v58 }
 0x398   : > { %v660_v56 = vld [vmem:[#allocation5] sm:$0xff] }
 0x399   : > { %1045 = vrcp.f32 %v660_v56 }
 0x3a3   : > { %v1046_v57 = vpop.eup %1045 }
 0x3a4   : > { %664 = vperm.xlu1 %1034, %v1046_v57  }
 0x3d5   : > { %v647_v61 = vpop.f32.mrb[8].mxu0 }
 0x3d6   : > { %v653_v62 = vadd.f32 %v647_v61, %v604_v60  ;;  %v949_v63 = vpop.f32.mrb[9].mxu0 }
 0x3d7   : > { %v650_v0 = vpop.f32.mrb[10].mxu0 }
 0x3d8   : > { %654 = vst.msk [vmem:[#allocation6] sm:$0xff] %vm400_vm4, %v653_v62  ;;  %v950_v1 = vpop.f32.mrb[11].mxu0 }
 0x3df   : > { %v659_v3 = vld [vmem:[#allocation6] sm:$0xff] }
 0x423   : > { %v665_v2 = vpop.permute.xlu1 %664 }
 0x424   : > { %v667_v4 = vmul.f32 %v665_v2, %v659_v3 }
 0x426   : > { %v669_v5 = vpack.c.bf16 %v667_v4, %v667_v4 }
 0x428   : > { %954 = vmatmul.mubr.msk.bf16.vlgmr.msra.gmra.mrb[8].mxu1 %vm400_vm4, %v669_v5 }
 0x4f8   : > { %723 = sbr.rel (!%p719_p1) target bundleno = 1287 (0x507), region = 56 }
 0x4fb   : > { %v711_v7 = vpop.f32.mrb[8].mxu1 }
 0x4fc   : > { %v717_v8 = vadd.f32 %v711_v7, %v668_v6  ;;  %v955_v9 = vpop.f32.mrb[9].mxu1 }
 0x4fd   : > { %v714_v10 = vpop.f32.mrb[10].mxu1 }
 0x4fe   : > { %718 = vst.msk [vmem:[#allocation7] sm:$0xff] %vm349_vm3, %v717_v8  ;;  %v956_v11 = vpop.f32.mrb[11].mxu1 }
 0x505   : > { %v724_v12 = vld [vmem:[#allocation7] sm:$0xff] }
 0x506   : > { %725 = vst.msk [vmem:[%s292_s14] sm:$0xff] %vm349_vm3, %v724_v12 }
 0x507 PF: > { %s892_s20 = sshll.u32 %s1129_s22, 7  ;;  %s740_s28 = sshll.u32 %s292_s14, 4  ;;  %s741_s28 = int_to_ptr.vmem [resolvable:$true] %s740_s28 }
 0x508   : > { %s1313_s24 = scalar_lea.hbm %s1369_s5, %s892_s20  ;;  %s1385_s29 = sand.u32 1, %s1117_s19  }
 0x509   : > { %s727_s6 = scalar_lea.sflag [#allocation9], %s1385_s29  ;;  %s1047_s9 = scalar_lea.vmem %s741_s28, 128 }
 0x50a   : > { %p1048_p2 = scmp.ne.s32.totalorder %s741_s28, %s1047_s9  ;;  %s1148_s10 = smov [#allocation8]  }
 0x50b   : > { %s1051_s13 = sshll.u32 %s1148_s10, 4  ;;  %s1052_s13 = int_to_ptr.vmem [resolvable:$false] %s1051_s13 }
 0x50c   : > { %p1049_p4 = pnand %p1048_p2, %p1228_p3  ;;  %s1053_s16 = scalar_lea.vmem %s1052_s13, 256 }
 0x50d   : > { %p1054_p6 = scmp.lt.s32.totalorder %s741_s28, %s1052_s13  ;;  %p1055_p7 = scmp.lt.s32.totalorder %s1053_s16, %s1047_s9 }
 0x50e   : > { %p1050_p5 = pneg %p1049_p4 }
 0x50f   : > { %p1056_p8 = por %p1055_p7, %p1054_p6 }
 0x511   : > { %p1057_p10 = pnand %p1056_p8, %p1050_p5 }
 0x513   : > { %1060 = shalt.err (!%p1057_p10)
}
 0x514   : > { %s1061_s22 = scalar_lea.hbm %s1313_s24, 128  ;;  %s1065_s26 = scalar_lea.hbm %s1369_s5, 256 }
 0x515   : > { %p1062_p11 = scmp.ne.s32.totalorder %s1313_s24, %s1061_s22  ;;  %p1066_p0 = scmp.lt.u32.totalorder %s1313_s24, %s1369_s5 }
 0x516   : > { %p1067_p1 = scmp.lt.u32.totalorder %s1065_s26, %s1061_s22  ;;  %p1069_p4 = scmp.lt.u32.totalorder %s1061_s22, %s1313_s24 }
 0x517   : > { %p1063_p12 = pnand %p1062_p11, %p1228_p3 }
 0x518   : > { %p1068_p2 = por %p1067_p1, %p1066_p0 }
 0x519   : > { %p1064_p13 = pneg %p1063_p12 }
 0x51a   : > { %p1070_p5 = por %p1069_p4, %p1068_p2 }
 0x51c   : > { %p1071_p6 = pnand %p1070_p5, %p1064_p13 }
 0x51e   : > { %1074 = shalt.err (!%p1071_p6)
}
 0x51f   : > { %957 = dma.vmem_to_hbm [thread:$0]  (%p1228_p3), %s741_s28, 128, %s1313_s24, %s727_s6  }
 0x520 PF: > { %p963_p7 = scmp.ge.s32.totalorder %s1141_s25, 2  ;;  %s752_s12 = sand.u32 1, %s1113_s18  }
 0x521   : > { %s753_s15 = scalar_lea.sflag [#allocation9], %s752_s12 }
 0x522   : > { %p960_p8 = pnand %p963_p7, %p1238_p9 }
 0x524   : > { %1108 = dma.done.wait (!%p960_p8), %s753_s15, 128  }
 0x525   : > { %1110 = vsyncadd (!%p960_p8), %s753_s15, 4294967168  ;;  %s18_s25 = sadd.s32 1, %s1141_s25   ;;  %s1387_s14 = sld [smem:[#allocation11_spill]] }
 0x526   : > { %p15_p10 = scmp.ge.s32.totalorder %s18_s25, 10   ;;  %s1388_s20 = sld [smem:[#allocation17_spill]] }
 0x527   : > { %s1389_s21 = sld [smem:[#allocation12_spill]]  ;;  %s1390_s22 = sld [smem:[#allocation13_spill]] }
 0x528   : > { %s1391_s23 = sld [smem:[#allocation14_spill]]  ;;  %s1392_s24 = sld [smem:[#allocation15_spill]] }
 0x529   : > { %s1393_s18 = smov %s1117_s19  ;;  %17 = sbr.rel (!%p15_p10) target bundleno = 5 (0x5), region = 104 }
 0x52b   : > { %s1394_s19 = smov %s1387_s14 }
 0x530   :  { %758 = vsyncpa [#allocation9], 1 }
 0x531   :  { %760 = vsyncpa [#allocation9 + $0x1], 1 }

</bundles_post_ra>
